<compile_context>
chip_gen: v6e
topology: v6e:2x2x1
jax: 0.10.0
libtpu: 0.0.40
codegen_flags: <defaults>
</compile_context>

<pallas_src>
import jax
import jax.numpy as jnp
from jax.experimental import pallas as pl
from jax.experimental.pallas import tpu as pltpu


def _round_up(x: int, m: int) -> int:
    return ((x + m - 1) // m) * m


# ---------------------------------------------------------------------------
# Kernel 1: fold the Linear(2H, 1) weight into per-node scalar scores.
# One-off O(N*H) work; runs as a single un-gridded call.
# ---------------------------------------------------------------------------
def _fold_scores_kernel(zc_ref, zd_ref, wc_ref, wd_ref, sc_ref, sd_ref):
    sc_ref[...] = jnp.dot(zc_ref[...], wc_ref[...],
                          preferred_element_type=jnp.float32)   # (Nc, 1)
    sd_ref[...] = jnp.dot(zd_ref[...], wd_ref[...],
                          preferred_element_type=jnp.float32)   # (Nd, 1)


# ---------------------------------------------------------------------------
# Kernel 2: per-edge gather + combine, tiled over E, lane-major layout.
#   idx_ref    : (2, TE) int32  row 0 = cell idx, row 1 = drug idx + Nc
#   scores_ref : (1, N)  f32    concatenated per-node scores (resident)
#   b_ref      : (1,)    f32    bias, SMEM scalar
#   out_ref    : (1, TE) f32
# Merged one-hot gather: each edge column of the (N, TE) one-hot has two ones,
# so one (1,N)@(N,TE) MXU push yields score_c[row] + score_d[col].
# TODO(synk): for very large node counts (N >= ~1e5) switch the gather to a
# scalar-prefetched (PrefetchScalarGridSpec) per-edge take; one-hot compares
# are O(E*N) on the VPU.
# ---------------------------------------------------------------------------
def _edge_gather_kernel(idx_ref, scores_ref, b_ref, out_ref):
    scores = scores_ref[...]                       # (1, N)
    n_total = scores.shape[1]
    te = out_ref.shape[1]

    idx = idx_ref[...]                             # (2, TE) int32
    row_idx = idx[0:1, :]                          # (1, TE)
    col_idx = idx[1:2, :]                          # (1, TE), already shifted by Nc

    iota_n = jax.lax.broadcasted_iota(jnp.int32, (n_total, te), 0)
    onehot = ((iota_n == row_idx) | (iota_n == col_idx)).astype(jnp.float32)

    out = jnp.dot(scores, onehot, preferred_element_type=jnp.float32)  # (1, TE)
    out_ref[...] = out + b_ref[0]


def edge_decoder(z_cell, z_drug, row, col, weight, bias, *, tile_e=512):
    """weight: (1, 2H) torch nn.Linear layout; bias: (1,). Returns (E,) f32."""
    n_cell, hidden = z_cell.shape
    n_drug = z_drug.shape[0]
    n_total = n_cell + n_drug
    n_edges = row.shape[0]

    zc = z_cell.astype(jnp.float32)
    zd = z_drug.astype(jnp.float32)
    wc = weight[:, :hidden].T.astype(jnp.float32)        # (H, 1)
    wd = weight[:, hidden:].T.astype(jnp.float32)        # (H, 1)

    # ---- one-off weight folding into per-node scores (Pallas kernel 1) ----
    sc, sd = pl.pallas_call(
        _fold_scores_kernel,
        out_shape=(jax.ShapeDtypeStruct((n_cell, 1), jnp.float32),
                   jax.ShapeDtypeStruct((n_drug, 1), jnp.float32)),
    )(zc, zd, wc, wd)
    scores = jnp.concatenate([sc, sd], axis=0).reshape(1, n_total)   # (1, N)

    # ---- lane-major edge tiling (TE multiple of 128, tail padded) ---------
    te = _round_up(min(tile_e, _round_up(n_edges, 128)), 128)
    e_pad = _round_up(n_edges, te)
    idx = jnp.stack([row.astype(jnp.int32),
                     col.astype(jnp.int32) + n_cell], axis=0)        # (2, E)
    idx = jnp.pad(idx, ((0, 0), (0, e_pad - n_edges)))  # pad w/ idx 0, sliced below

    b_smem = bias.reshape(1).astype(jnp.float32)

    out = pl.pallas_call(
        _edge_gather_kernel,
        out_shape=jax.ShapeDtypeStruct((1, e_pad), jnp.float32),
        grid=(e_pad // te,),
        in_specs=[
            pl.BlockSpec((2, te), lambda i: (0, i)),            # merged indices
            pl.BlockSpec((1, n_total), lambda i: (0, 0)),       # resident scores
            pl.BlockSpec(memory_space=pltpu.MemorySpace.SMEM),  # bias scalar
        ],
        out_specs=pl.BlockSpec((1, te), lambda i: (0, i)),
        compiler_params=pltpu.CompilerParams(
            dimension_semantics=("parallel",)),
    )(idx, scores, b_smem)

    return out.reshape(-1)[:n_edges]


def _reference(z_cell, z_drug, row, col, weight, bias):
    z = jnp.concatenate([z_cell[row], z_drug[col]], axis=-1)
    return (z @ weight.T + bias).reshape(-1)


if __name__ == "__main__":
    key = jax.random.PRNGKey(0)

    # Config 1: tiny shapes matching the module's hetero-graph head.
    # Config 2: multi-tile grid (exercises E tiling + tail padding).
    configs = [
        dict(hidden=32, n_cell=6, n_drug=5, n_edges=8),
        dict(hidden=64, n_cell=100, n_drug=40, n_edges=700),
    ]

    for cfg in configs:
        key, k1, k2, k3, k4, k5, k6 = jax.random.split(key, 7)
        hidden, n_cell = cfg["hidden"], cfg["n_cell"]
        n_drug, n_edges = cfg["n_drug"], cfg["n_edges"]

        z_cell = jax.random.normal(k1, (n_cell, hidden), dtype=jnp.float32)
        z_drug = jax.random.normal(k2, (n_drug, hidden), dtype=jnp.float32)
        row = jax.random.randint(k3, (n_edges,), 0, n_cell, dtype=jnp.int32)
        col = jax.random.randint(k4, (n_edges,), 0, n_drug, dtype=jnp.int32)
        weight = (jax.random.uniform(k5, (1, 2 * hidden), dtype=jnp.float32) - 0.5) * 0.2
        bias = (jax.random.uniform(k6, (1,), dtype=jnp.float32) - 0.5) * 0.2

        out = edge_decoder(z_cell, z_drug, row, col, weight, bias)
        jax.block_until_ready(out)

        ref = _reference(z_cell, z_drug, row, col, weight, bias)
        assert out.shape == (n_edges,)
        assert jnp.allclose(out, ref, atol=1e-5, rtol=1e-5), \
            float(jnp.max(jnp.abs(out - ref)))

    print("KERNEL_OK")
</pallas_src>

<mosaic_0001>
module attributes {stable_mosaic.version = 11 : i64} {
  func.func @_fold_scores_kernel(%arg0: memref<6x32xf32, #tpu.memory_space<vmem>>, %arg1: memref<5x32xf32, #tpu.memory_space<vmem>>, %arg2: memref<32x1xf32, #tpu.memory_space<vmem>>, %arg3: memref<32x1xf32, #tpu.memory_space<vmem>>, %arg4: memref<6x1xf32, #tpu.memory_space<vmem>>, %arg5: memref<5x1xf32, #tpu.memory_space<vmem>>) attributes {dimension_semantics = [], scalar_prefetch = 0 : i64, scratch_operands = 0 : i64, tpu.core_type = #tpu.core_type<tc>} {
    %c0 = arith.constant 0 : index
    %c0_0 = arith.constant 0 : index
    %0 = vector.load %arg0[%c0, %c0_0] : memref<6x32xf32, #tpu.memory_space<vmem>>, vector<6x32xf32>
    %c0_1 = arith.constant 0 : index
    %c0_2 = arith.constant 0 : index
    %1 = vector.load %arg2[%c0_1, %c0_2] : memref<32x1xf32, #tpu.memory_space<vmem>>, vector<32x1xf32>
    %cst = arith.constant dense<0.000000e+00> : vector<6x1xf32>
    %2 = tpu.matmul %0, %1, %cst {dimension_numbers = #tpu.dot_dimension_numbers<[1], [0], [0], [1], [0, 0, 1, 1], [], []>} : vector<6x32xf32>, vector<32x1xf32>, vector<6x1xf32> -> vector<6x1xf32>
    %c0_3 = arith.constant 0 : index
    %c0_4 = arith.constant 0 : index
    %3 = vector.load %arg4[%c0_3, %c0_4] : memref<6x1xf32, #tpu.memory_space<vmem>>, vector<6x1xf32>
    tpu.vector_store %arg4[%c0_3, %c0_4], %2 {strides = array<i32>} : memref<6x1xf32, #tpu.memory_space<vmem>>, vector<6x1xf32>,
    %c0_5 = arith.constant 0 : index
    %c0_6 = arith.constant 0 : index
    %4 = vector.load %arg1[%c0_5, %c0_6] : memref<5x32xf32, #tpu.memory_space<vmem>>, vector<5x32xf32>
    %c0_7 = arith.constant 0 : index
    %c0_8 = arith.constant 0 : index
    %5 = vector.load %arg3[%c0_7, %c0_8] : memref<32x1xf32, #tpu.memory_space<vmem>>, vector<32x1xf32>
    %cst_9 = arith.constant dense<0.000000e+00> : vector<5x1xf32>
    %6 = tpu.matmul %4, %5, %cst_9 {dimension_numbers = #tpu.dot_dimension_numbers<[1], [0], [0], [1], [0, 0, 1, 1], [], []>} : vector<5x32xf32>, vector<32x1xf32>, vector<5x1xf32> -> vector<5x1xf32>
    %c0_10 = arith.constant 0 : index
    %c0_11 = arith.constant 0 : index
    %7 = vector.load %arg5[%c0_10, %c0_11] : memref<5x1xf32, #tpu.memory_space<vmem>>, vector<5x1xf32>
    tpu.vector_store %arg5[%c0_10, %c0_11], %6 {strides = array<i32>} : memref<5x1xf32, #tpu.memory_space<vmem>>, vector<5x1xf32>,
    return
  }
}

</mosaic_0001>

<bundles_post_ra>
// kernel: tpu_custom_call.1
= control target key start
LH: loop header
LB: loop body
LE: loop exit
PB: predicated region body
PF: predicated region fallthrough
CT: control target
= control target key end

     0   :  { %v224_v0 = vmov 0.0   ;;  %vm24_vm0 = vcmask 261120   ;;  %vm225_vm1 = vmmov 0   ;;  %vm98_vm2 = vcmask 5120   ;;  %s292_s2 = inlined_call_operand.vmem [shape: f32[32,1], index: 2, kind: input, shape index: {}]   ;;  %s293_s3 = inlined_call_operand.vmem [shape: f32[32,1], index: 3, kind: input, shape index: {}]   ;;  %s294_s0 = inlined_call_operand.vmem [shape: f32[6,32], index: 0, kind: input, shape index: {}]   ;;  %s295_s1 = inlined_call_operand.vmem [shape: f32[5,32], index: 1, kind: input, shape index: {}]   ;;  %s296_s4 = inlined_call_operand.vmem [shape: f32[6,1], index: 4, kind: output, shape index: {0}]   ;;  %s297_s5 = inlined_call_operand.vmem [shape: f32[5,1], index: 5, kind: output, shape index: {1}]  }
   0x1   :  { %200 = vmatprep.subr.mxu0 %v224_v0  ;;  %211 = vmatprep.subr.mxu1 %v224_v0  ;;  %v23_v1 = vld [vmem:[%s292_s2 + $0x18] sm:$0xff]  ;;  %v22_v3 = vld [vmem:[%s292_s2 + $0x10] sm:$0xff]  ;;  %v21_v5 = vld [vmem:[%s292_s2 + $0x8] sm:$0xff]  ;;  %vm178_vm3 = vcmask 4096  }
   0x2   :  { %v104_v2 = vld [vmem:[%s293_s3 + $0x18] sm:$0xff]  ;;  %201 = vmatpush3.msra.mxu0 %v23_v1  ;;  %v103_v4 = vld [vmem:[%s293_s3 + $0x10] sm:$0xff]  ;;  %v102_v6 = vld [vmem:[%s293_s3 + $0x8] sm:$0xff]  ;;  %208 = vmatprep.mubr.msk.f32.mxu0 %vm225_vm1, %v224_v0 }
   0x3   :  { %212 = vmatpush3.msra.mxu1 %v104_v2  ;;  %202 = vmatprep.subr.mxu0 %v224_v0  ;;  %v20_v7 = vld [vmem:[%s292_s2] sm:$0xff] }
   0x4   :  { %213 = vmatprep.subr.mxu1 %v224_v0  ;;  %203 = vmatpush3.msra.mxu0 %v22_v3  ;;  %v101_v8 = vld [vmem:[%s293_s3] sm:$0xff] }
   0x5   :  { %214 = vmatpush3.msra.mxu1 %v103_v4  ;;  %204 = vmatprep.subr.mxu0 %v224_v0  ;;  %v19_v9 = vld [vmem:[%s294_s0] sm:$0x3f] }
   0x6   :  { %215 = vmatprep.subr.mxu1 %v224_v0  ;;  %205 = vmatpush3.msra.mxu0 %v21_v5  ;;  %v100_v10 = vld [vmem:[%s295_s1] sm:$0x1f] }
   0x7   :  { %216 = vmatpush3.msra.mxu1 %v102_v6  ;;  %206 = vmatprep.subr.mxu0 %v224_v0 }
   0x8   :  { %217 = vmatprep.subr.mxu1 %v224_v0  ;;  %207 = vmatpush3.msra.mxu0 %v20_v7 }
   0x9   :  { %218 = vmatpush3.msra.mxu1 %v101_v8  ;;  %219 = vmatprep.mubr.msk.f32.mxu1 %vm225_vm1, %v224_v0 }
   0xa   :  { %209 = vmatmul.mubr.msk.f32.vlgmr.msra.gmra.mxu0 %vm24_vm0, %v19_v9  ;;  %220 = vmatmul.mubr.msk.f32.vlgmr.msra.gmra.mxu1 %vm24_vm0, %v100_v10 }
  0xca   :  { %v94_v11 = vpop.f32.mrf.mxu0  ;;  %v174_v12 = vpop.f32.mrf.mxu1 }
  0xcb   :  { %99 = vst.msk [vmem:[%s296_s4] sm:$0x3f] %vm98_vm2, %v94_v11 }
  0xcc   :  { %179 = vst.msk [vmem:[%s297_s5] sm:$0x1f] %vm178_vm3, %v174_v12  ;;  %v210_v13 = vpop.f32.mrf.mxu0  ;;  %v221_v14 = vpop.f32.mrf.mxu1 }

</bundles_post_ra>
